<compile_context>
chip_gen: v6e
topology: v6e:2x2x1
jax: 0.10.0
libtpu: 0.0.40
codegen_flags: <defaults>
</compile_context>

<pallas_src>
import functools

import jax
import jax.numpy as jnp
from jax.experimental import pallas as pl
from jax.experimental.pallas import tpu as pltpu


def _linear_kernel(params_ref, xT_ref, o_ref, *, K):
    # params_ref: SMEM (K+1,)      = [w_0 .. w_{K-1}, b]
    # xT_ref:     VMEM (K, TILE_N)  lane-dense rows of x^T
    # o_ref:      VMEM (1, TILE_N)  lane-dense output row of y^T
    xv = xT_ref[...]                              # (K, TILE_N)
    acc = xv[0:1, :] * params_ref[0]
    for k in range(1, K):                         # K is a static Python int (=3)
        acc = acc + xv[k:k + 1, :] * params_ref[k]
    o_ref[...] = (acc + params_ref[K]).astype(o_ref.dtype)


def linear_forward(x, weight, bias, *, tile_n=2048):
    """x: (N, K) f32, weight: (O, K) f32 with O == 1, bias: (O,) f32 -> (N, O) f32."""
    N, K = x.shape
    O, K2 = weight.shape
    assert K == K2 and O == 1

    # Scalars for SMEM: [w_0, ..., w_{K-1}, b]  (reads weight (O, K) directly,
    # no wrapper-side weight.T materialization).
    params = jnp.concatenate([weight.reshape(-1), bias.reshape(-1)]).astype(jnp.float32)

    # Layout plumbing (not compute): put N on the lane axis.
    xT = x.T                                       # (K, N)

    if N <= tile_n:
        tile = N                                   # one full-width block; block dim == full dim
        n_pad = N
    else:
        tile = tile_n                              # multiple of 128 -> legal lane tiling
        n_pad = pl.cdiv(N, tile) * tile
        if n_pad != N:
            xT = jnp.pad(xT, ((0, 0), (0, n_pad - N)))

    grid = (n_pad // tile,)

    yT = pl.pallas_call(
        functools.partial(_linear_kernel, K=K),
        out_shape=jax.ShapeDtypeStruct((1, n_pad), x.dtype),
        grid=grid,
        in_specs=[
            # whole (K+1,) param vector in SMEM, shared by every grid step
            pl.BlockSpec(memory_space=pltpu.MemorySpace.SMEM),
            pl.BlockSpec((K, tile), lambda i: (0, i),
                         memory_space=pltpu.MemorySpace.VMEM),
        ],
        out_specs=pl.BlockSpec((1, tile), lambda i: (0, i),
                               memory_space=pltpu.MemorySpace.VMEM),
        compiler_params=pltpu.CompilerParams(
            dimension_semantics=("parallel",),     # megacore shards N-blocks on v7x
        ),
    )(params, xT)

    return yT[:, :N].reshape(N, O)


if __name__ == "__main__":
    key = jax.random.PRNGKey(0)
    kx, kw, kb, kx2 = jax.random.split(key, 4)

    N, K, O = 8, 3, 1                              # batch=8, in_features=3, out_features=1

    # Deterministic parameter init mimicking nn.Linear's U(-1/sqrt(K), 1/sqrt(K))
    bound = 1.0 / jnp.sqrt(jnp.float32(K))
    weight = jax.random.uniform(kw, (O, K), jnp.float32, minval=-bound, maxval=bound)
    bias = jax.random.uniform(kb, (O,), jnp.float32, minval=-bound, maxval=bound)

    # --- small demo shape (single full-width block path) ---
    x = jax.random.normal(kx, (N, K), jnp.float32)
    y = jax.block_until_ready(linear_forward(x, weight, bias))
    y_ref = x @ weight.T + bias
    assert y.shape == (N, O)
    assert jnp.allclose(y, y_ref, atol=1e-5, rtol=1e-5), "mismatch vs reference (small)"

    # --- larger ragged shape exercising the tiled + padded grid path ---
    N2 = 5000
    x2 = jax.random.normal(kx2, (N2, K), jnp.float32)
    y2 = jax.block_until_ready(linear_forward(x2, weight, bias))
    y2_ref = x2 @ weight.T + bias
    assert y2.shape == (N2, O)
    assert jnp.allclose(y2, y2_ref, atol=1e-5, rtol=1e-5), "mismatch vs reference (tiled)"

    print("KERNEL_OK")
</pallas_src>

<mosaic_0001>
module attributes {stable_mosaic.version = 11 : i64} {
  func.func @_linear_kernel(%arg0: i32, %arg1: memref<4xf32, #tpu.memory_space<smem>>, %arg2: memref<3x8xf32, #tpu.memory_space<vmem>>, %arg3: memref<1x8xf32, #tpu.memory_space<vmem>>) attributes {dimension_semantics = [#tpu.dimension_semantics<parallel>], iteration_bounds = array<i64: 1>, scalar_prefetch = 0 : i64, scratch_operands = 0 : i64, tpu.core_type = #tpu.core_type<tc>, window_params = [{transform_indices = @transform_0, window_bounds = array<i64: 4>}, {transform_indices = @transform_1, window_bounds = array<i64: 3, 8>}, {transform_indices = @transform_2, window_bounds = array<i64: 1, 8>}]} {
    %c0 = arith.constant 0 : index
    %c0_0 = arith.constant 0 : index
    %0 = vector.load %arg2[%c0, %c0_0] : memref<3x8xf32, #tpu.memory_space<vmem>>, vector<3x8xf32>
    %1 = vector.extract_strided_slice %0 {offsets = [0, 0], sizes = [1, 8], strides = [1, 1]} : vector<3x8xf32> to vector<1x8xf32>
    %c0_1 = arith.constant 0 : index
    %2 = memref.load %arg1[%c0_1] : memref<4xf32, #tpu.memory_space<smem>>
    %3 = vector.broadcast %2 : f32 to vector<1x8xf32>
    %4 = arith.mulf %1, %3 : vector<1x8xf32>
    %5 = vector.extract_strided_slice %0 {offsets = [1, 0], sizes = [1, 8], strides = [1, 1]} : vector<3x8xf32> to vector<1x8xf32>
    %c1 = arith.constant 1 : index
    %6 = memref.load %arg1[%c1] : memref<4xf32, #tpu.memory_space<smem>>
    %7 = vector.broadcast %6 : f32 to vector<1x8xf32>
    %8 = arith.mulf %5, %7 : vector<1x8xf32>
    %9 = arith.addf %4, %8 : vector<1x8xf32>
    %10 = vector.extract_strided_slice %0 {offsets = [2, 0], sizes = [1, 8], strides = [1, 1]} : vector<3x8xf32> to vector<1x8xf32>
    %c2 = arith.constant 2 : index
    %11 = memref.load %arg1[%c2] : memref<4xf32, #tpu.memory_space<smem>>
    %12 = vector.broadcast %11 : f32 to vector<1x8xf32>
    %13 = arith.mulf %10, %12 : vector<1x8xf32>
    %14 = arith.addf %9, %13 : vector<1x8xf32>
    %c3 = arith.constant 3 : index
    %15 = memref.load %arg1[%c3] : memref<4xf32, #tpu.memory_space<smem>>
    %16 = vector.broadcast %15 : f32 to vector<1x8xf32>
    %17 = arith.addf %14, %16 : vector<1x8xf32>
    %c0_2 = arith.constant 0 : index
    %c0_3 = arith.constant 0 : index
    %18 = vector.load %arg3[%c0_2, %c0_3] : memref<1x8xf32, #tpu.memory_space<vmem>>, vector<1x8xf32>
    tpu.vector_store %arg3[%c0_2, %c0_3], %17 {strides = array<i32>} : memref<1x8xf32, #tpu.memory_space<vmem>>, vector<1x8xf32>,
    return
  }
  func.func @transform_0(%arg0: i32) -> i32 {
    %c0_i32 = arith.constant 0 : i32
    %c0_i32_0 = arith.constant 0 : i32
    return %c0_i32 : i32
  }
  func.func @transform_1(%arg0: i32) -> (i32, i32) {
    %c0_i32 = arith.constant 0 : i32
    %c0_i32_0 = arith.constant 0 : i32
    return %c0_i32, %arg0 : i32, i32
  }
  func.func @transform_2(%arg0: i32) -> (i32, i32) {
    %c0_i32 = arith.constant 0 : i32
    %c0_i32_0 = arith.constant 0 : i32
    return %c0_i32, %arg0 : i32, i32
  }
}

</mosaic_0001>

<bundles_post_ra>
// kernel: tpu_custom_call.1
= control target key start
LH: loop header
LB: loop body
LE: loop exit
PB: predicated region body
PF: predicated region fallthrough
CT: control target
= control target key end

     0   :  { %7 = vsyncpa [#allocation5], 0  ;;  %s161_s0 = inlined_call_operand.hbm [shape: f32[4], index: 0, kind: input, shape index: {}]   ;;  %s162_s1 = inlined_call_operand.hbm [shape: f32[3,8], index: 1, kind: input, shape index: {}]   ;;  %s163_s2 = inlined_call_operand.hbm [shape: f32[1,8], index: 2, kind: output, shape index: {}]  }
   0x1   :  { %8 = vsyncpa [#allocation3], 0 }
   0x2   :  { %9 = vsyncpa [#allocation4], 0  ;;  %s134_s9 = smov [#allocation2]   ;;  %s135_s12 = smov [#allocation6]  }
   0x3   :  { %17 = dma.hbm_to_smem %s161_s0, 16, %s134_s9, [#allocation5]  }
   0x4   :  { %s24_s13 = sshll.u32 %s135_s12, 4  ;;  %s25_s13 = int_to_ptr.vmem [resolvable:$true] %s24_s13 }
   0x5   :  { %s96_s14 = scalar_lea.vmem %s25_s13, 64  ;;  %p101_p1 = scmp.lt.s32.totalorder %s25_s13, %s25_s13 }
   0x6   :  { %p97_p0 = scmp.ne.s32.totalorder %s25_s13, %s96_s14  ;;  %p102_p2 = scmp.lt.s32.totalorder %s96_s14, %s96_s14 }
   0x8   :  { %p103_p3 = por %p102_p2, %p101_p1 }
   0xa   :  { %p104_p4 = pnand %p103_p3, %p97_p0 }
   0xc   :  { %107 = shalt.err (!%p104_p4)
}
   0xd   :  { %27 = dma.hbm_to_vmem [thread:$0]  %s162_s1, 64, %s25_s13, [#allocation3]  }
   0xe   :  { %128 = dma.done.wait [#allocation5], 16  }
   0xf   :  { %129 = vsyncadd [#allocation5], 4294967280 }
  0x10   :  { %130 = dma.done.wait [#allocation3], 64  }
  0x11   :  { %131 = vsyncadd [#allocation3], 4294967232 }
  0x12   :  { %34 = sfence }
  0x13   :  { %s36_s0 = sld [smem:[#allocation2]]  ;;  %v35_v0 = vld [vmem:[#allocation6] sm:$0x7]  ;;  %s136_s1 = smov [#allocation7]   ;;  %vm56_vm0 = vcmask 57344  }
  0x14   :  { %s74_s17 = sld [smem:[#allocation2 + $0x1]]  ;;  %s64_s20 = sshll.u32 %s136_s1, 4  ;;  %s65_s20 = int_to_ptr.vmem [resolvable:$true] %s64_s20 }
  0x15   :  { %s75_s18 = sld [smem:[#allocation2 + $0x2]]  ;;  %s108_s21 = scalar_lea.vmem %s65_s20, 16 }
  0x16   :  { %s76_s19 = sld [smem:[#allocation2 + $0x3]]  ;;  %p109_p5 = scmp.ne.s32.totalorder %s65_s20, %s108_s21 }
  0x17   :  { %s112_s22 = scalar_lea.vmem %s65_s20, 32  ;;  %p113_p6 = scmp.lt.s32.totalorder %s65_s20, %s65_s20 }
  0x18   :  { %p114_p7 = scmp.lt.s32.totalorder %s112_s22, %s108_s21 }
  0x19   :  { %v37_v1 = vstv %s36_s0 }
  0x1a   :  { %v40_v2 = vstv %s74_s17  ;;  %v38_v3 = vmul.f32 %v37_v1, %v35_v0  ;;  %p115_p8 = por %p114_p7, %p113_p6 }
  0x1b   :  { %v41_v4 = vmul.f32 %v40_v2, %v35_v0  ;;  %v47_v5 = vstv %s75_s18 }
  0x1c   :  { %v48_v6 = vmul.f32 %v47_v5, %v35_v0  ;;  %v54_v10 = vstv %s76_s19  ;;  %p116_p9 = pnand %p115_p8, %p109_p5 }
  0x1d   :  { %v43_v7 = vrot.slane %v41_v4, 1 }
  0x1e   :  { %v50_v8 = vrot.slane %v48_v6, 2 }
  0x1f   :  { %v45_v9 = vadd.f32 %v43_v7, %v38_v3 }
  0x21   :  { %v52_v11 = vadd.f32 %v50_v8, %v45_v9 }
  0x23   :  { %v55_v12 = vadd.f32 %v54_v10, %v52_v11 }
  0x25   :  { %57 = vst.msk [vmem:[#allocation7] sm:$0x1] %vm56_vm0, %v55_v12 }
  0x26   :  { %119 = shalt.err (!%p116_p9)
}
  0x27   :  { %67 = dma.vmem_to_hbm [thread:$0]  %s65_s20, 16, %s163_s2, [#allocation4]  }
  0x28   :  { %132 = dma.done.wait [#allocation4], 16  }
  0x29   :  { %133 = vsyncadd [#allocation4], 4294967280 }
  0x2a   :  { %71 = vsyncpa [#allocation3], 1 }
  0x2b   :  { %72 = vsyncpa [#allocation4], 1 }
  0x2c   :  { %73 = vsyncpa [#allocation5], 1 }

</bundles_post_ra>
